<compile_context>
chip_gen: v7x
topology: tpu7x:2x2x1
jax: 0.10.0
libtpu: 0.0.40
codegen_flags: <defaults>
</compile_context>

<pallas_src>
import functools

import jax
import jax.numpy as jnp
from jax.experimental import pallas as pl
from jax.experimental.pallas import tpu as pltpu


# ----------------------------- Pallas kernels -----------------------------

def _proj_kernel(x_ref, m1_ref, m2_ref, s1_ref, s2_ref):
    """Count-sketch projection tile: two (TN, C) @ (C, TD) MXU matmuls.

    x_ref          : (TN, C)  activation tile (resident across the D axis).
    m1_ref/m2_ref  : (C, TD)  streamed sketch-matrix tiles.
    s1_ref/s2_ref  : (TN, TD) projection outputs (f32 accumulation via
                     preferred_element_type, cast on store).
    """
    x = x_ref[...]
    s1_ref[...] = jnp.dot(
        x, m1_ref[...], preferred_element_type=jnp.float32).astype(s1_ref.dtype)
    s2_ref[...] = jnp.dot(
        x, m2_ref[...], preferred_element_type=jnp.float32).astype(s2_ref.dtype)


def _cmul_pool_kernel(re1_ref, im1_ref, re2_ref, im2_ref,
                      re_o_ref, im_o_ref, *, inv_hw, hw, block_s, needs_mask):
    """Fused complex multiply + spatial mean pool (frequency domain).

    Grid = (Dh_tiles, B, HW_tiles); the HW axis (last) is a reduction
    ("arbitrary") with the (1, 1, TDh) output blocks kept resident as
    accumulators (init on step 0, scale by 1/HW on the last step).
    """
    s = pl.program_id(2)

    @pl.when(s == 0)
    def _():
        re_o_ref[...] = jnp.zeros_like(re_o_ref)
        im_o_ref[...] = jnp.zeros_like(im_o_ref)

    re1, im1 = re1_ref[...], im1_ref[...]            # (1, TS, TDh) f32
    re2, im2 = re2_ref[...], im2_ref[...]
    re_p = re1 * re2 - im1 * im2
    im_p = re1 * im2 + im1 * re2

    if needs_mask:                                   # static Python bool
        row = jax.lax.broadcasted_iota(jnp.int32, re_p.shape, 1)
        valid = (s * block_s + row) < hw
        re_p = jnp.where(valid, re_p, 0.0)
        im_p = jnp.where(valid, im_p, 0.0)

    re_o_ref[...] += jnp.sum(re_p, axis=1, keepdims=True)
    im_o_ref[...] += jnp.sum(im_p, axis=1, keepdims=True)

    @pl.when(s == pl.num_programs(2) - 1)
    def _():
        re_o_ref[...] = re_o_ref[...] * inv_hw
        im_o_ref[...] = im_o_ref[...] * inv_hw


def _pick_block(total, target, align):
    """Largest `align`-multiple <= min(target, total), preferring divisors of
    `total` (so no edge masking / masked stores); falls back to full extent."""
    cap = min(target, total)
    if cap >= total:
        return total
    cap = (cap // align) * align
    if cap < align:
        return total
    for b in range(cap, align - 1, -align):
        if total % b == 0:
            return b
    return cap


# ------------------------------- Wrapper -----------------------------------

def cbp_forward(x_nchw, m1, m2, *, thresh=1e-8,
                block_n=512, block_d=1024, block_s=256, block_dh=512,
                compute_dtype=jnp.bfloat16, proj_out_dtype=jnp.float32,
                vmem_limit_bytes=48 << 20):
    """Forward pass of CBP.  x_nchw: (B, C, H, W); m1/m2: (C, D) sketches.

    Default tiles (block_n=512, block_d=1024, block_s=256, block_dh=512) keep
    the projection step ~10 MiB and the pool step ~4 MiB of VMEM at the
    production shapes (C=512, D=8192), safely under every generation's limit;
    vmem_limit_bytes=48 MiB leaves headroom under v7x's 64 MiB physical VMEM
    while allowing larger block_n / block_s on v5e / v6e (128 MiB physical).
    """
    B, C, H, W = x_nchw.shape
    D = m1.shape[1]
    Dh = D // 2 + 1
    Dh_pad = ((Dh + 127) // 128) * 128               # lane-dense frequency axis
    HW = H * W
    N = B * HW

    # Channels-last flatten, identical to the reference permute + view.  The
    # transpose and the compute-dtype cast fuse into a single XLA pass.
    x_flat = jnp.transpose(x_nchw, (0, 2, 3, 1)).reshape(N, C)
    x_c = x_flat.astype(compute_dtype)
    m1_c = m1.astype(compute_dtype)                  # entries +-1/0 -> exact cast
    m2_c = m2.astype(compute_dtype)

    row_align = 16 if compute_dtype == jnp.bfloat16 else 8
    tn = _pick_block(N, block_n, row_align)
    td = _pick_block(D, block_d, 128)
    grid_n = pl.cdiv(N, tn)
    grid_d = pl.cdiv(D, td)

    cp_kwargs = {}
    if vmem_limit_bytes is not None:
        cp_kwargs["vmem_limit_bytes"] = vmem_limit_bytes
    proj_params = pltpu.CompilerParams(
        dimension_semantics=("parallel", "parallel"), **cp_kwargs)
    pool_params = pltpu.CompilerParams(
        dimension_semantics=("parallel", "parallel", "arbitrary"), **cp_kwargs)

    # --- Stage 1: count-sketch projection, tiled over N and D ---------------
    # NOTE(perf review, bf16 writeback): projection outputs stay f32 by
    # default.  XLA's FFT custom call only accepts f32 operands, so a bf16
    # intermediate forces a materialized convert pass (2B write + 2B read +
    # 4B write + 4B read = 12 B/elem) vs 8 B/elem for a direct f32 handoff --
    # bf16 storage is a net HBM-traffic loss.  proj_out_dtype is exposed for
    # experimentation anyway.
    s1, s2 = pl.pallas_call(
        _proj_kernel,
        grid=(grid_n, grid_d),
        in_specs=[pl.BlockSpec((tn, C), lambda i, j: (i, 0)),   # resident over j
                  pl.BlockSpec((C, td), lambda i, j: (0, j)),
                  pl.BlockSpec((C, td), lambda i, j: (0, j))],
        out_specs=(pl.BlockSpec((tn, td), lambda i, j: (i, j)),
                   pl.BlockSpec((tn, td), lambda i, j: (i, j))),
        out_shape=(jax.ShapeDtypeStruct((N, D), proj_out_dtype),
                   jax.ShapeDtypeStruct((N, D), proj_out_dtype)),
        compiler_params=proj_params,
    )(x_c, m1_c, m2_c)

    # --- Stage 2: real FFT (XLA custom call) --------------------------------
    # TODO(synk): FFT/IFFT have no Pallas TPU primitive; rfft/irfft go through
    # XLA's FFT custom call (real input -> half spectrum).
    f1 = jnp.fft.rfft(s1, axis=-1)                    # (N, Dh) complex64
    f2 = jnp.fft.rfft(s2, axis=-1)

    # real/imag split + zero-pad of the frequency axis to a lane multiple;
    # extraction, pad and reshape fuse into one XLA pass per plane.
    pad = Dh_pad - Dh

    def _plane(z, part):
        p = part(z)
        if pad:
            p = jnp.pad(p, ((0, 0), (0, pad)))
        return p.reshape(B, HW, Dh_pad)

    re1, im1 = _plane(f1, jnp.real), _plane(f1, jnp.imag)
    re2, im2 = _plane(f2, jnp.real), _plane(f2, jnp.imag)
    # TODO(synk): the four-plane materialization could be removed entirely by
    # bitcasting the complex64 spectra to interleaved f32 and deinterleaving
    # in-kernel (pltpu.roll + select); skipped pending complex-bitcast support.

    ts = _pick_block(HW, block_s, 8)
    tdh = _pick_block(Dh_pad, block_dh, 128)
    grid_s = pl.cdiv(HW, ts)
    grid_dh = pl.cdiv(Dh_pad, tdh)
    needs_mask = (HW % ts) != 0

    spec_in = pl.BlockSpec((1, ts, tdh), lambda d, b, s: (b, s, d))
    spec_out = pl.BlockSpec((1, 1, tdh), lambda d, b, s: (b, 0, d))  # accumulator

    # --- Stage 3: fused complex multiply + mean pool over HW ----------------
    pre, pim = pl.pallas_call(
        functools.partial(_cmul_pool_kernel, inv_hw=1.0 / HW, hw=HW,
                          block_s=ts, needs_mask=needs_mask),
        grid=(grid_dh, B, grid_s),
        in_specs=[spec_in] * 4,
        out_specs=(spec_out, spec_out),
        out_shape=(jax.ShapeDtypeStruct((B, 1, Dh_pad), jnp.float32),
                   jax.ShapeDtypeStruct((B, 1, Dh_pad), jnp.float32)),
        compiler_params=pool_params,
    )(re1, im1, re2, im2)

    # --- Stage 4: inverse FFT + tiny epilogue (XLA) --------------------------
    pooled = pre[:, 0, :Dh] + 1j * pim[:, 0, :Dh]     # crop lane padding
    y = jnp.fft.irfft(pooled, n=D, axis=-1)           # (B, D) f32

    sumsq = jnp.sum(y * y, axis=-1, keepdims=True)
    y = y * jax.lax.rsqrt(jnp.maximum(sumsq, 1e-24))  # == F.normalize, eps=1e-12
    return jnp.sign(y) * jnp.sqrt(jnp.abs(y) + thresh)


# -------------------------- Parameters & reference --------------------------

def make_cbp_params(key, input_dim, proj_dim):
    """Deterministic count-sketch matrices, same shapes as the torch module."""
    k1, k2, k3, k4 = jax.random.split(key, 4)
    h1 = jax.random.randint(k1, (input_dim,), 0, proj_dim)
    h2 = jax.random.randint(k2, (input_dim,), 0, proj_dim)
    w1 = (2 * jax.random.randint(k3, (input_dim,), 0, 2) - 1).astype(jnp.float32)
    w2 = (2 * jax.random.randint(k4, (input_dim,), 0, 2) - 1).astype(jnp.float32)
    rows = jnp.arange(input_dim)
    m1 = jnp.zeros((input_dim, proj_dim), jnp.float32).at[rows, h1].set(w1)
    m2 = jnp.zeros((input_dim, proj_dim), jnp.float32).at[rows, h2].set(w2)
    return m1, m2


def cbp_reference(x_nchw, m1, m2, thresh=1e-8, lhs_dtype=jnp.float32):
    """Pure-JAX f32 reference mirroring the PyTorch forward.  `lhs_dtype`
    lets the kernel's bf16 activation quantization be mimicked exactly."""
    B, C, H, W = x_nchw.shape
    D = m1.shape[1]
    x_flat = jnp.transpose(x_nchw, (0, 2, 3, 1)).reshape(-1, C)
    x_flat = x_flat.astype(lhs_dtype).astype(jnp.float32)
    s1 = jnp.einsum("nc,cd->nd", x_flat, m1, precision="highest")
    s2 = jnp.einsum("nc,cd->nd", x_flat, m2, precision="highest")
    tmp = jnp.real(jnp.fft.ifft(jnp.fft.fft(s1, axis=-1) *
                                jnp.fft.fft(s2, axis=-1), axis=-1))
    y = tmp.reshape(B, H * W, D).mean(axis=1)
    y = y / jnp.maximum(jnp.linalg.norm(y, axis=-1, keepdims=True), 1e-12)
    return jnp.sign(y) * jnp.sqrt(jnp.abs(y) + thresh)


# ---------------------------------- Main ------------------------------------

if __name__ == "__main__":
    # Small, module-consistent shapes: batch=2, channels=32, spatial=16x16,
    # projDim=128 (N = 512 rows).  Blocks chosen so the row and spatial grids
    # have >1 step, exercising the tiling and accumulation paths.
    B, C, H, W = 2, 32, 16, 16
    PROJ_DIM = 128
    THRESH = 1e-8

    key = jax.random.PRNGKey(0)
    kparam, kx = jax.random.split(key)
    m1, m2 = make_cbp_params(kparam, C, PROJ_DIM)
    x = jax.random.normal(kx, (B, C, H, W), dtype=jnp.float32)

    fwd_bf16 = jax.jit(functools.partial(cbp_forward, thresh=THRESH,
                                         block_n=128, block_s=64))
    fwd_f32 = jax.jit(functools.partial(cbp_forward, thresh=THRESH,
                                        block_n=128, block_s=64,
                                        compute_dtype=jnp.float32))

    y_ref = jax.block_until_ready(cbp_reference(x, m1, m2, thresh=THRESH))

    # f32 path: the tiled / rfft / pool-before-ifft pipeline is numerically
    # equivalent to the reference.
    y32 = jax.block_until_ready(fwd_f32(x, m1, m2))
    assert y32.shape == (B, PROJ_DIM), y32.shape
    assert bool(jnp.all(jnp.isfinite(y32)))
    assert bool(jnp.allclose(y32, y_ref, atol=3e-3, rtol=3e-3))

    # Default path (bf16 activations on the MXU, f32 accumulation + f32
    # projection writeback).  Compare against a reference with the identical
    # activation quantization (tight), plus a loose relative-L2 check against
    # the exact f32 reference (the signed sqrt amplifies near-zero diffs).
    y = jax.block_until_ready(fwd_bf16(x, m1, m2))
    y_qref = cbp_reference(x, m1, m2, thresh=THRESH, lhs_dtype=jnp.bfloat16)
    assert y.shape == (B, PROJ_DIM), y.shape
    assert bool(jnp.all(jnp.isfinite(y)))
    assert bool(jnp.allclose(y, y_qref, atol=5e-3, rtol=5e-3))
    rel = float(jnp.linalg.norm(y - y_ref) / jnp.linalg.norm(y_ref))
    assert rel < 5e-2, rel

    print("KERNEL_OK")
</pallas_src>

<mosaic_0001>
module attributes {stable_mosaic.version = 11 : i64} {
  func.func @_proj_kernel(%arg0: i32, %arg1: i32, %arg2: memref<128x32xf32, #tpu.memory_space<vmem>>, %arg3: memref<32x128xf32, #tpu.memory_space<vmem>>, %arg4: memref<32x128xf32, #tpu.memory_space<vmem>>, %arg5: memref<128x128xf32, #tpu.memory_space<vmem>>, %arg6: memref<128x128xf32, #tpu.memory_space<vmem>>) attributes {dimension_semantics = [#tpu.dimension_semantics<parallel>, #tpu.dimension_semantics<parallel>], iteration_bounds = array<i64: 4, 1>, scalar_prefetch = 0 : i64, scratch_operands = 0 : i64, tpu.core_type = #tpu.core_type<tc>, window_params = [{transform_indices = @transform_0, window_bounds = array<i64: 128, 32>}, {transform_indices = @transform_1, window_bounds = array<i64: 32, 128>}, {transform_indices = @transform_2, window_bounds = array<i64: 32, 128>}, {transform_indices = @transform_3, window_bounds = array<i64: 128, 128>}, {transform_indices = @transform_4, window_bounds = array<i64: 128, 128>}]} {
    %c0 = arith.constant 0 : index
    %c0_0 = arith.constant 0 : index
    %0 = vector.load %arg2[%c0, %c0_0] : memref<128x32xf32, #tpu.memory_space<vmem>>, vector<128x32xf32>
    %c0_1 = arith.constant 0 : index
    %c0_2 = arith.constant 0 : index
    %1 = vector.load %arg3[%c0_1, %c0_2] : memref<32x128xf32, #tpu.memory_space<vmem>>, vector<32x128xf32>
    %cst = arith.constant dense<0.000000e+00> : vector<128x128xf32>
    %2 = tpu.matmul %0, %1, %cst {dimension_numbers = #tpu.dot_dimension_numbers<[1], [0], [0], [1], [0, 0, 1, 1], [], []>} : vector<128x32xf32>, vector<32x128xf32>, vector<128x128xf32> -> vector<128x128xf32>
    %c0_3 = arith.constant 0 : index
    %c0_4 = arith.constant 0 : index
    %3 = vector.load %arg5[%c0_3, %c0_4] : memref<128x128xf32, #tpu.memory_space<vmem>>, vector<128x128xf32>
    tpu.vector_store %arg5[%c0_3, %c0_4], %2 {strides = array<i32>} : memref<128x128xf32, #tpu.memory_space<vmem>>, vector<128x128xf32>,
    %c0_5 = arith.constant 0 : index
    %c0_6 = arith.constant 0 : index
    %4 = vector.load %arg4[%c0_5, %c0_6] : memref<32x128xf32, #tpu.memory_space<vmem>>, vector<32x128xf32>
    %cst_7 = arith.constant dense<0.000000e+00> : vector<128x128xf32>
    %5 = tpu.matmul %0, %4, %cst_7 {dimension_numbers = #tpu.dot_dimension_numbers<[1], [0], [0], [1], [0, 0, 1, 1], [], []>} : vector<128x32xf32>, vector<32x128xf32>, vector<128x128xf32> -> vector<128x128xf32>
    %c0_8 = arith.constant 0 : index
    %c0_9 = arith.constant 0 : index
    %6 = vector.load %arg6[%c0_8, %c0_9] : memref<128x128xf32, #tpu.memory_space<vmem>>, vector<128x128xf32>
    tpu.vector_store %arg6[%c0_8, %c0_9], %5 {strides = array<i32>} : memref<128x128xf32, #tpu.memory_space<vmem>>, vector<128x128xf32>,
    return
  }
  func.func @transform_0(%arg0: i32, %arg1: i32) -> (i32, i32) {
    %c0_i32 = arith.constant 0 : i32
    %c0_i32_0 = arith.constant 0 : i32
    return %arg0, %c0_i32 : i32, i32
  }
  func.func @transform_1(%arg0: i32, %arg1: i32) -> (i32, i32) {
    %c0_i32 = arith.constant 0 : i32
    %c0_i32_0 = arith.constant 0 : i32
    return %c0_i32, %arg1 : i32, i32
  }
  func.func @transform_2(%arg0: i32, %arg1: i32) -> (i32, i32) {
    %c0_i32 = arith.constant 0 : i32
    %c0_i32_0 = arith.constant 0 : i32
    return %c0_i32, %arg1 : i32, i32
  }
  func.func @transform_3(%arg0: i32, %arg1: i32) -> (i32, i32) {
    %c0_i32 = arith.constant 0 : i32
    return %arg0, %arg1 : i32, i32
  }
  func.func @transform_4(%arg0: i32, %arg1: i32) -> (i32, i32) {
    %c0_i32 = arith.constant 0 : i32
    return %arg0, %arg1 : i32, i32
  }
}

module attributes {stable_mosaic.version = 11 : i64} {
  func.func @_cmul_pool_kernel(%arg0: i32, %arg1: i32, %arg2: i32, %arg3: memref<1x64x128xf32, #tpu.memory_space<vmem>>, %arg4: memref<1x64x128xf32, #tpu.memory_space<vmem>>, %arg5: memref<1x64x128xf32, #tpu.memory_space<vmem>>, %arg6: memref<1x64x128xf32, #tpu.memory_space<vmem>>, %arg7: memref<1x1x128xf32, #tpu.memory_space<vmem>>, %arg8: memref<1x1x128xf32, #tpu.memory_space<vmem>>) attributes {dimension_semantics = [#tpu.dimension_semantics<parallel>, #tpu.dimension_semantics<parallel>, #tpu.dimension_semantics<arbitrary>], iteration_bounds = array<i64: 1, 2, 4>, scalar_prefetch = 0 : i64, scratch_operands = 0 : i64, tpu.core_type = #tpu.core_type<tc>, window_params = [{transform_indices = @transform_0, window_bounds = array<i64: 1, 64, 128>}, {transform_indices = @transform_1, window_bounds = array<i64: 1, 64, 128>}, {transform_indices = @transform_2, window_bounds = array<i64: 1, 64, 128>}, {transform_indices = @transform_3, window_bounds = array<i64: 1, 64, 128>}, {transform_indices = @transform_4, window_bounds = array<i64: 1, 1, 128>}, {transform_indices = @transform_5, window_bounds = array<i64: 1, 1, 128>}]} {
    %c0_i32 = arith.constant 0 : i32
    %0 = arith.cmpi eq, %arg2, %c0_i32 : i32
    %1 = arith.extui %0 : i1 to i32
    %c0_i32_0 = arith.constant 0 : i32
    %2 = arith.cmpi ne, %1, %c0_i32_0 : i32
    scf.if %2 {
      %cst_26 = arith.constant 0.000000e+00 : f32
      %26 = vector.broadcast %cst_26 : f32 to vector<1x1x128xf32>
      %c0_27 = arith.constant 0 : index
      %c0_28 = arith.constant 0 : index
      %c0_29 = arith.constant 0 : index
      %27 = vector.load %arg7[%c0_27, %c0_28, %c0_29] : memref<1x1x128xf32, #tpu.memory_space<vmem>>, vector<1x1x128xf32>
      tpu.vector_store %arg7[%c0_27, %c0_28, %c0_29], %26 {strides = array<i32>} : memref<1x1x128xf32, #tpu.memory_space<vmem>>, vector<1x1x128xf32>,
      %cst_30 = arith.constant 0.000000e+00 : f32
      %28 = vector.broadcast %cst_30 : f32 to vector<1x1x128xf32>
      %c0_31 = arith.constant 0 : index
      %c0_32 = arith.constant 0 : index
      %c0_33 = arith.constant 0 : index
      %29 = vector.load %arg8[%c0_31, %c0_32, %c0_33] : memref<1x1x128xf32, #tpu.memory_space<vmem>>, vector<1x1x128xf32>
      tpu.vector_store %arg8[%c0_31, %c0_32, %c0_33], %28 {strides = array<i32>} : memref<1x1x128xf32, #tpu.memory_space<vmem>>, vector<1x1x128xf32>,
    } else {
    }
    %c0 = arith.constant 0 : index
    %c0_1 = arith.constant 0 : index
    %c0_2 = arith.constant 0 : index
    %3 = vector.load %arg3[%c0, %c0_1, %c0_2] : memref<1x64x128xf32, #tpu.memory_space<vmem>>, vector<1x64x128xf32>
    %c0_3 = arith.constant 0 : index
    %c0_4 = arith.constant 0 : index
    %c0_5 = arith.constant 0 : index
    %4 = vector.load %arg4[%c0_3, %c0_4, %c0_5] : memref<1x64x128xf32, #tpu.memory_space<vmem>>, vector<1x64x128xf32>
    %c0_6 = arith.constant 0 : index
    %c0_7 = arith.constant 0 : index
    %c0_8 = arith.constant 0 : index
    %5 = vector.load %arg5[%c0_6, %c0_7, %c0_8] : memref<1x64x128xf32, #tpu.memory_space<vmem>>, vector<1x64x128xf32>
    %c0_9 = arith.constant 0 : index
    %c0_10 = arith.constant 0 : index
    %c0_11 = arith.constant 0 : index
    %6 = vector.load %arg6[%c0_9, %c0_10, %c0_11] : memref<1x64x128xf32, #tpu.memory_space<vmem>>, vector<1x64x128xf32>
    %7 = arith.mulf %3, %5 : vector<1x64x128xf32>
    %8 = arith.mulf %4, %6 : vector<1x64x128xf32>
    %9 = arith.subf %7, %8 : vector<1x64x128xf32>
    %10 = arith.mulf %3, %6 : vector<1x64x128xf32>
    %11 = arith.mulf %4, %5 : vector<1x64x128xf32>
    %12 = arith.addf %10, %11 : vector<1x64x128xf32>
    %c0_12 = arith.constant 0 : index
    %c0_13 = arith.constant 0 : index
    %c0_14 = arith.constant 0 : index
    %13 = vector.load %arg7[%c0_12, %c0_13, %c0_14] : memref<1x1x128xf32, #tpu.memory_space<vmem>>, vector<1x1x128xf32>
    %cst = arith.constant dense<0.000000e+00> : vector<1x128xf32>
    %14 = vector.multi_reduction <add>, %9, %cst [1] : vector<1x64x128xf32> to vector<1x128xf32>
    %15 = vector.shape_cast %14 : vector<1x128xf32> to vector<1x1x128xf32>
    %16 = arith.addf %13, %15 : vector<1x1x128xf32>
    %c0_15 = arith.constant 0 : index
    %c0_16 = arith.constant 0 : index
    %c0_17 = arith.constant 0 : index
    %17 = vector.load %arg7[%c0_15, %c0_16, %c0_17] : memref<1x1x128xf32, #tpu.memory_space<vmem>>, vector<1x1x128xf32>
    tpu.vector_store %arg7[%c0_15, %c0_16, %c0_17], %16 {strides = array<i32>} : memref<1x1x128xf32, #tpu.memory_space<vmem>>, vector<1x1x128xf32>,
    %c0_18 = arith.constant 0 : index
    %c0_19 = arith.constant 0 : index
    %c0_20 = arith.constant 0 : index
    %18 = vector.load %arg8[%c0_18, %c0_19, %c0_20] : memref<1x1x128xf32, #tpu.memory_space<vmem>>, vector<1x1x128xf32>
    %cst_21 = arith.constant dense<0.000000e+00> : vector<1x128xf32>
    %19 = vector.multi_reduction <add>, %12, %cst_21 [1] : vector<1x64x128xf32> to vector<1x128xf32>
    %20 = vector.shape_cast %19 : vector<1x128xf32> to vector<1x1x128xf32>
    %21 = arith.addf %18, %20 : vector<1x1x128xf32>
    %c0_22 = arith.constant 0 : index
    %c0_23 = arith.constant 0 : index
    %c0_24 = arith.constant 0 : index
    %22 = vector.load %arg8[%c0_22, %c0_23, %c0_24] : memref<1x1x128xf32, #tpu.memory_space<vmem>>, vector<1x1x128xf32>
    tpu.vector_store %arg8[%c0_22, %c0_23, %c0_24], %21 {strides = array<i32>} : memref<1x1x128xf32, #tpu.memory_space<vmem>>, vector<1x1x128xf32>,
    %c3_i32 = arith.constant 3 : i32
    %23 = arith.cmpi eq, %arg2, %c3_i32 : i32
    %24 = arith.extui %23 : i1 to i32
    %c0_i32_25 = arith.constant 0 : i32
    %25 = arith.cmpi ne, %24, %c0_i32_25 : i32
    scf.if %25 {
      %c0_26 = arith.constant 0 : index
      %c0_27 = arith.constant 0 : index
      %c0_28 = arith.constant 0 : index
      %26 = vector.load %arg7[%c0_26, %c0_27, %c0_28] : memref<1x1x128xf32, #tpu.memory_space<vmem>>, vector<1x1x128xf32>
      %cst_29 = arith.constant 3.906250e-03 : f32
      %27 = vector.broadcast %cst_29 : f32 to vector<1x1x128xf32>
      %28 = arith.mulf %26, %27 : vector<1x1x128xf32>
      %c0_30 = arith.constant 0 : index
      %c0_31 = arith.constant 0 : index
      %c0_32 = arith.constant 0 : index
      %29 = vector.load %arg7[%c0_30, %c0_31, %c0_32] : memref<1x1x128xf32, #tpu.memory_space<vmem>>, vector<1x1x128xf32>
      tpu.vector_store %arg7[%c0_30, %c0_31, %c0_32], %28 {strides = array<i32>} : memref<1x1x128xf32, #tpu.memory_space<vmem>>, vector<1x1x128xf32>,
      %c0_33 = arith.constant 0 : index
      %c0_34 = arith.constant 0 : index
      %c0_35 = arith.constant 0 : index
      %30 = vector.load %arg8[%c0_33, %c0_34, %c0_35] : memref<1x1x128xf32, #tpu.memory_space<vmem>>, vector<1x1x128xf32>
      %cst_36 = arith.constant 3.906250e-03 : f32
      %31 = vector.broadcast %cst_36 : f32 to vector<1x1x128xf32>
      %32 = arith.mulf %30, %31 : vector<1x1x128xf32>
      %c0_37 = arith.constant 0 : index
      %c0_38 = arith.constant 0 : index
      %c0_39 = arith.constant 0 : index
      %33 = vector.load %arg8[%c0_37, %c0_38, %c0_39] : memref<1x1x128xf32, #tpu.memory_space<vmem>>, vector<1x1x128xf32>
      tpu.vector_store %arg8[%c0_37, %c0_38, %c0_39], %32 {strides = array<i32>} : memref<1x1x128xf32, #tpu.memory_space<vmem>>, vector<1x1x128xf32>,
    } else {
    }
    return
  }
  func.func @transform_0(%arg0: i32, %arg1: i32, %arg2: i32) -> (i32, i32, i32) {
    %c0_i32 = arith.constant 0 : i32
    return %arg1, %arg2, %arg0 : i32, i32, i32
  }
  func.func @transform_1(%arg0: i32, %arg1: i32, %arg2: i32) -> (i32, i32, i32) {
    %c0_i32 = arith.constant 0 : i32
    return %arg1, %arg2, %arg0 : i32, i32, i32
  }
  func.func @transform_2(%arg0: i32, %arg1: i32, %arg2: i32) -> (i32, i32, i32) {
    %c0_i32 = arith.constant 0 : i32
    return %arg1, %arg2, %arg0 : i32, i32, i32
  }
  func.func @transform_3(%arg0: i32, %arg1: i32, %arg2: i32) -> (i32, i32, i32) {
    %c0_i32 = arith.constant 0 : i32
    return %arg1, %arg2, %arg0 : i32, i32, i32
  }
  func.func @transform_4(%arg0: i32, %arg1: i32, %arg2: i32) -> (i32, i32, i32) {
    %c0_i32 = arith.constant 0 : i32
    %c0_i32_0 = arith.constant 0 : i32
    return %arg1, %c0_i32, %arg0 : i32, i32, i32
  }
  func.func @transform_5(%arg0: i32, %arg1: i32, %arg2: i32) -> (i32, i32, i32) {
    %c0_i32 = arith.constant 0 : i32
    %c0_i32_0 = arith.constant 0 : i32
    return %arg1, %c0_i32, %arg0 : i32, i32, i32
  }
}

</mosaic_0001>

<bundles_post_ra>
// kernel: cbp_forward.2
= control target key start
LH: loop header
LB: loop body
LE: loop exit
PB: predicated region body
PF: predicated region fallthrough
CT: control target
= control target key end

     0   :  { %10 = vsyncpa [#allocation3], 0  ;;  %s1424_s0 = inlined_call_operand.hbm [shape: f32[512,32], index: 0, kind: input, shape index: {}]   ;;  %s1425_s1 = inlined_call_operand.vmem [shape: f32[32,128], index: 1, kind: input, shape index: {}]   ;;  %s1426_s2 = inlined_call_operand.vmem [shape: f32[32,128], index: 2, kind: input, shape index: {}]   ;;  %s1427_s3 = inlined_call_operand.vmem [shape: f32[512,128], index: 3, kind: output, shape index: {0}]   ;;  %s1428_s4 = inlined_call_operand.vmem [shape: f32[512,128], index: 4, kind: output, shape index: {1}]  }
   0x1   :  { %12 = vsyncpa [#allocation3 + $0x1], 0  ;;  %s1188_s15 = smov 0   ;;  %s1190_s16 = smov 0  }
   0x2   :  { %s1192_s17 = smov 0   ;;  %s1194_s18 = smov 0  }
   0x3   :  { %s1196_s19 = smov 0   ;;  %s1198_s20 = smov 0  }
   0x4 LB: > { %s851_s21 = sadd.s32 4294967295, %s1158_s20   ;;  %s30_s22 = sadd.s32 1, %s1154_s19  ;;  %s1158_s20 = sphi %s1198_s20, %s18_s20   ;;  %s1154_s19 = sphi %s1196_s19, %s1436_s19   ;;  %s1150_s18 = sphi %s1194_s18, %s1435_s18   ;;  %s1146_s17 = sphi %s1192_s17, %s1434_s17   ;;  %s1142_s16 = sphi %s1190_s16, %s1433_s16   ;;  %s1138_s15 = sphi %s1188_s15, %s1432_s15  }
   0x5   : > { %p32_p0 = scmp.ge.s32.totalorder %s30_s22, 4  ;;  %s37_s23 = sadd.s32 1, %s1146_s17 }
   0x6   : > { %p44_p1 = scmp.ne.s32.totalorder %s1146_s17, %s1142_s16  ;;  %p45_p2 = scmp.eq.s32.totalorder %s1158_s20, 0 }
   0x7   : > { %s1438_s22 = smov (%p32_p0, %s30_s22), 0  ;;  %p50_p4 = scmp.ne.s32.totalorder %s1142_s16, %s1138_s15 }
   0x8   : > { %p1224_p3 = por %p45_p2, %p44_p1  ;;  %s34_s25 = ssub.s32 %s1154_s19, %s1438_s22 }
   0x9   : > { %p51_p5 = scmp.eq.s32.totalorder %s851_s21, 0  ;;  %p35_p6 = scmp.eq.s32.totalorder %s34_s25, 0 }
   0xa   : > { %p1027_p8 = scmp.lt.s32.totalorder %s1158_s20, 4  ;;  %s196_s28 = sand.u32 1, %s1146_s17  }
   0xb   : > { %p1231_p7 = por %p51_p5, %p50_p4  ;;  %s900_s29 = sshll.u32 %s1154_s19, 11 }
   0xc   : > { %s1237_s27 = scalar_select %p35_p6, %s1146_s17, %s37_s23  }
   0xd   : > { %s857_s30 = sshll.u32 %s196_s28, 7  ;;  %s1244_s7 = scalar_lea.hbm %s1424_s0, %s900_s29 }
   0xe   : > { %s200_s8 = scalar_lea.vmem [#allocation2], %s857_s30  ;;  %p1248_p9 = pnand %p1027_p8, %p1224_p3 }
   0xf   : > { %s207_s9 = sshll.u32 %s200_s8, 4  ;;  %s1254_s11 = scalar_lea.sflag [#allocation3], %s196_s28  ;;  %s1252_s9 = int_to_ptr.vmem [resolvable:$true] %s207_s9 }
  0x10   : > { %s1078_s12 = scalar_lea.hbm %s1244_s7, 2048  ;;  %p1080_p11 = pneg %p1248_p9 }
  0x11   : > { %p1079_p10 = scmp.ne.s32.totalorder %s1244_s7, %s1078_s12  ;;  %s1083_s15 = scalar_lea.hbm %s1424_s0, 8192 }
  0x12   : > { %p1084_p0 = scmp.lt.u32.totalorder %s1244_s7, %s1424_s0  ;;  %p1085_p1 = scmp.lt.u32.totalorder %s1083_s15, %s1078_s12 }
  0x13   : > { %p1081_p12 = pnand %p1080_p11, %p1079_p10  ;;  %p1087_p3 = scmp.lt.u32.totalorder %s1078_s12, %s1244_s7 }
  0x14   : > { %p1086_p2 = por %p1085_p1, %p1084_p0 }
  0x15   : > { %p1082_p13 = pneg %p1081_p12 }
  0x16   : > { %p1088_p4 = por %p1087_p3, %p1086_p2 }
  0x18   : > { %p1089_p5 = pnand %p1088_p4, %p1082_p13 }
  0x1a   : > { %1092 = shalt.err (!%p1089_p5)
}
  0x1b   : > { %s1093_s24 = scalar_lea.vmem %s1252_s9, 2048  ;;  %s1160_s25 = smov [#allocation2]  }
  0x1c   : > { %p1094_p6 = scmp.ne.s32.totalorder %s1252_s9, %s1093_s24  ;;  %s1098_s28 = sshll.u32 %s1160_s25, 4  ;;  %s1099_s28 = int_to_ptr.vmem [resolvable:$false] %s1098_s28 }
  0x1d   : > { %s1100_s29 = scalar_lea.vmem %s1099_s28, 4096  ;;  %p1101_p12 = scmp.lt.s32.totalorder %s1252_s9, %s1099_s28 }
  0x1e   : > { %p1096_p8 = pnand %p1094_p6, %p1080_p11  ;;  %p1102_p0 = scmp.lt.s32.totalorder %s1100_s29, %s1093_s24 }
  0x20   : > { %p1097_p10 = pneg %p1096_p8  ;;  %p1103_p1 = por %p1102_p0, %p1101_p12 }
  0x22   : > { %p1104_p2 = pnand %p1103_p1, %p1097_p10 }
  0x24   : > { %1107 = shalt.err (!%p1104_p2)
}
  0x25   : > { %s1161_s30 = smov 128   ;;  %s1162_s5 = smov 8  }
  0x26   : > { %1026 = dma.hbm_to_vmem [thread:$0]  (!%p1248_p9), %s1244_s7, 2048, %s1252_s9, %s1254_s11, %s1161_s30, %s1161_s30, %s1162_s5  }
  0x27   : > { %p860_p11 = scmp.ge.s32.totalorder %s1158_s20, 1  ;;  %p215_p13 = scmp.lt.s32.totalorder %s1158_s20, 5 }
  0x29   : > { %p216_p3 = pnand %p860_p11, %p215_p13 }
  0x2a   : > { %s221_s6 = sand.u32 (!%p216_p3), 1, %s1142_s16  }
  0x2b   : > { %219 = sbr.rel (%p216_p3) target bundleno = 305 (0x131), region = 32  ;;  %s861_s8 = sshll.u32 (!%p216_p3), %s221_s6, 7 }
  0x2c   : > { %s222_s12 = scalar_lea.sflag (!%p216_p3), [#allocation3], %s221_s6  ;;  %s1285_s13 = scalar_lea.vmem (!%p216_p3), [#allocation2], %s861_s8 }
  0x32   : > { %1133 = dma.done.wait (%p1231_p7), %s222_s12, 2048  }
  0x33   : > { %1135 = vsyncadd (%p1231_p7), %s222_s12, 4294965248  ;;  %v312_v0 = vld [vmem:[%s1425_s1] sm:$0xff]  ;;  %v313_v1 = vld [vmem:[%s1425_s1 + $0x8] sm:$0xff]  ;;  %vm316_vm0 = vcmask 261120   ;;  %s862_s8 = sshll.u32 %s1150_s18, 4 }
  0x34   : > { %v526_v2 = vld [vmem:[%s1426_s2] sm:$0xff]  ;;  %v1005_v3 = vpack.c.bf16 %v313_v1, %v312_v0  ;;  %v527_v4 = vld [vmem:[%s1426_s2 + $0x8] sm:$0xff]  ;;  %v314_v5 = vld [vmem:[%s1425_s1 + $0x10] sm:$0xff]  ;;  %p279_p7 = scmp.lt.s32.totalorder %s862_s8, 63 }
  0x35   : > { %v315_v6 = vld [vmem:[%s1425_s1 + $0x18] sm:$0xff]  ;;  %v1013_v7 = vpack.c.bf16 %v527_v4, %v526_v2  ;;  %v528_v9 = vld [vmem:[%s1426_s2 + $0x10] sm:$0xff]  ;;  %v296_v11 = vld [vmem:[%s1285_s13] sm:$0xff] }
  0x36   : > { %v1009_v8 = vpack.c.bf16 %v315_v6, %v314_v5  ;;  %v529_v10 = vld [vmem:[%s1426_s2 + $0x18] sm:$0xff]  ;;  %1006 = vmatprep.subr.bf16.mxu0 %v1005_v3  ;;  %949 = vmatprep.mubr.msk.f32.mxu0 %vm316_vm0, %v296_v11  ;;  %v297_v13 = vld [vmem:[%s1285_s13 + $0x8] sm:$0xff]  ;;  %v298_v14 = vld [vmem:[%s1285_s13 + $0x10] sm:$0xff]  ;;  %s1440_s8 = smov (!%p279_p7, %s862_s8), 63 }
  0x37   : > { %v1017_v12 = vpack.c.bf16 %v529_v10, %v528_v9  ;;  %1014 = vmatprep.subr.bf16.mxu1 %v1013_v7  ;;  %1008 = vmatpush3.bf16.msra.mxu0 %v1005_v3  ;;  %v299_v15 = vld [vmem:[%s1285_s13 + $0x18] sm:$0xff]  ;;  %v300_v16 = vld [vmem:[%s1285_s13 + $0x20] sm:$0xff]  ;;  %v301_v17 = vld [vmem:[%s1285_s13 + $0x28] sm:$0xff]  ;;  %s863_s12 = sshll.u32 %s1440_s8, 3 }
  0x38   : > { %1016 = vmatpush3.bf16.msra.mxu1 %v1013_v7  ;;  %1010 = vmatprep.subr.bf16.mxu0 %v1009_v8  ;;  %v302_v18 = vld [vmem:[%s1285_s13 + $0x30] sm:$0xff]  ;;  %v303_v19 = vld [vmem:[%s1285_s13 + $0x38] sm:$0xff]  ;;  %v304_v20 = vld [vmem:[%s1285_s13 + $0x40] sm:$0xff]  ;;  %s1367_s7 = scalar_lea.vmem %s1427_s3, %s863_s12 }
  0x39   : > { %1018 = vmatprep.subr.bf16.mxu1 %v1017_v12  ;;  %981 = vmatprep.mubr.msk.f32.mxu1 %vm316_vm0, %v296_v11  ;;  %v305_v21 = vld [vmem:[%s1285_s13 + $0x48] sm:$0xff]  ;;  %v306_v22 = vld [vmem:[%s1285_s13 + $0x50] sm:$0xff]  ;;  %v307_v23 = vld [vmem:[%s1285_s13 + $0x58] sm:$0xff] }
  0x3a   : > { %v308_v24 = vld [vmem:[%s1285_s13 + $0x60] sm:$0xff]  ;;  %v309_v25 = vld [vmem:[%s1285_s13 + $0x68] sm:$0xff]  ;;  %v310_v26 = vld [vmem:[%s1285_s13 + $0x70] sm:$0xff] }
  0x3b   : > { %1012 = vmatpush3.bf16.msra.mxu0 %v1009_v8  ;;  %v311_v27 = vld [vmem:[%s1285_s13 + $0x78] sm:$0xff]  ;;  %s1372_s13 = scalar_lea.vmem %s1428_s4, %s863_s12 }
  0x3c   : > { %1020 = vmatpush3.bf16.msra.mxu1 %v1017_v12 }
  0x3e   : > { %950 = vmatmul.mubr.msk.f32.vlgmr.msra.gmra.mrb[0].mxu0 %vm316_vm0, %v297_v13 }
  0x3f   : > { %982 = vmatmul.mubr.msk.f32.vlgmr.msra.gmra.mrb[0].mxu1 %vm316_vm0, %v297_v13  ;;  %952 = vmatprep.mubr.msk.f32.mxu0 %vm316_vm0, %v298_v14 }
  0x40   : > { %984 = vmatprep.mubr.msk.f32.mxu1 %vm316_vm0, %v298_v14 }
  0x42   : > { %953 = vmatmul.mubr.msk.f32.gmra.mrb[2].mxu0 %vm316_vm0, %v299_v15 }
  0x43   : > { %985 = vmatmul.mubr.msk.f32.gmra.mrb[2].mxu1 %vm316_vm0, %v299_v15  ;;  %955 = vmatprep.mubr.msk.f32.mxu0 %vm316_vm0, %v300_v16 }
  0x44   : > { %987 = vmatprep.mubr.msk.f32.mxu1 %vm316_vm0, %v300_v16 }
  0x46   : > { %956 = vmatmul.mubr.msk.f32.gmra.mrb[4].mxu0 %vm316_vm0, %v301_v17 }
  0x47   : > { %988 = vmatmul.mubr.msk.f32.gmra.mrb[4].mxu1 %vm316_vm0, %v301_v17  ;;  %958 = vmatprep.mubr.msk.f32.mxu0 %vm316_vm0, %v302_v18 }
  0x48   : > { %990 = vmatprep.mubr.msk.f32.mxu1 %vm316_vm0, %v302_v18 }
  0x4a   : > { %959 = vmatmul.mubr.msk.f32.gmra.mrb[6].mxu0 %vm316_vm0, %v303_v19 }
  0x4b   : > { %991 = vmatmul.mubr.msk.f32.gmra.mrb[6].mxu1 %vm316_vm0, %v303_v19  ;;  %961 = vmatprep.mubr.msk.f32.mxu0 %vm316_vm0, %v304_v20 }
  0x4c   : > { %993 = vmatprep.mubr.msk.f32.mxu1 %vm316_vm0, %v304_v20 }
  0x4e   : > { %962 = vmatmul.mubr.msk.f32.gmra.mrb[8].mxu0 %vm316_vm0, %v305_v21 }
  0x4f   : > { %994 = vmatmul.mubr.msk.f32.gmra.mrb[8].mxu1 %vm316_vm0, %v305_v21  ;;  %964 = vmatprep.mubr.msk.f32.mxu0 %vm316_vm0, %v306_v22 }
  0x50   : > { %996 = vmatprep.mubr.msk.f32.mxu1 %vm316_vm0, %v306_v22 }
  0x52   : > { %965 = vmatmul.mubr.msk.f32.gmra.mrb[10].mxu0 %vm316_vm0, %v307_v23 }
  0x53   : > { %997 = vmatmul.mubr.msk.f32.gmra.mrb[10].mxu1 %vm316_vm0, %v307_v23  ;;  %967 = vmatprep.mubr.msk.f32.mxu0 %vm316_vm0, %v308_v24 }
  0x54   : > { %999 = vmatprep.mubr.msk.f32.mxu1 %vm316_vm0, %v308_v24 }
  0x56   : > { %968 = vmatmul.mubr.msk.f32.gmra.mrb[12].mxu0 %vm316_vm0, %v309_v25 }
  0x57   : > { %1000 = vmatmul.mubr.msk.f32.gmra.mrb[12].mxu1 %vm316_vm0, %v309_v25  ;;  %970 = vmatprep.mubr.msk.f32.mxu0 %vm316_vm0, %v310_v26 }
  0x58   : > { %1002 = vmatprep.mubr.msk.f32.mxu1 %vm316_vm0, %v310_v26 }
  0x5a   : > { %971 = vmatmul.mubr.msk.f32.gmra.mrb[14].mxu0 %vm316_vm0, %v311_v27 }
  0x5b   : > { %1003 = vmatmul.mubr.msk.f32.gmra.mrb[14].mxu1 %vm316_vm0, %v311_v27 }
 0x111   : > { %v951_v28 = vpop.f32.mrb[0].mxu0 }
 0x112   : > { %511 = vst [vmem:[%s1367_s7 + $0x8] sm:$0xff] %v951_v28  ;;  %v983_v29 = vpop.f32.mrb[0].mxu1  ;;  %v431_v30 = vpop.f32.mrb[1].mxu0 }
 0x113   : > { %676 = vst [vmem:[%s1372_s13 + $0x8] sm:$0xff] %v983_v29  ;;  %510 = vst [vmem:[%s1367_s7] sm:$0xff] %v431_v30  ;;  %v596_v31 = vpop.f32.mrb[1].mxu1 }
 0x114   : > { %675 = vst [vmem:[%s1372_s13] sm:$0xff] %v596_v31 }
 0x115   : > { %v954_v32 = vpop.f32.mrb[2].mxu0 }
 0x116   : > { %513 = vst [vmem:[%s1367_s7 + $0x18] sm:$0xff] %v954_v32  ;;  %v986_v33 = vpop.f32.mrb[2].mxu1  ;;  %v441_v34 = vpop.f32.mrb[3].mxu0 }
 0x117   : > { %678 = vst [vmem:[%s1372_s13 + $0x18] sm:$0xff] %v986_v33  ;;  %512 = vst [vmem:[%s1367_s7 + $0x10] sm:$0xff] %v441_v34  ;;  %v606_v35 = vpop.f32.mrb[3].mxu1 }
 0x118   : > { %677 = vst [vmem:[%s1372_s13 + $0x10] sm:$0xff] %v606_v35 }
 0x119   : > { %v957_v36 = vpop.f32.mrb[4].mxu0 }
 0x11a   : > { %515 = vst [vmem:[%s1367_s7 + $0x28] sm:$0xff] %v957_v36  ;;  %v989_v37 = vpop.f32.mrb[4].mxu1  ;;  %v451_v38 = vpop.f32.mrb[5].mxu0 }
 0x11b   : > { %680 = vst [vmem:[%s1372_s13 + $0x28] sm:$0xff] %v989_v37  ;;  %514 = vst [vmem:[%s1367_s7 + $0x20] sm:$0xff] %v451_v38  ;;  %v616_v39 = vpop.f32.mrb[5].mxu1 }
 0x11c   : > { %679 = vst [vmem:[%s1372_s13 + $0x20] sm:$0xff] %v616_v39 }
 0x11d   : > { %v960_v40 = vpop.f32.mrb[6].mxu0 }
 0x11e   : > { %517 = vst [vmem:[%s1367_s7 + $0x38] sm:$0xff] %v960_v40  ;;  %v992_v41 = vpop.f32.mrb[6].mxu1  ;;  %v461_v42 = vpop.f32.mrb[7].mxu0 }
 0x11f   : > { %682 = vst [vmem:[%s1372_s13 + $0x38] sm:$0xff] %v992_v41  ;;  %516 = vst [vmem:[%s1367_s7 + $0x30] sm:$0xff] %v461_v42  ;;  %v626_v43 = vpop.f32.mrb[7].mxu1 }
 0x120   : > { %681 = vst [vmem:[%s1372_s13 + $0x30] sm:$0xff] %v626_v43 }
 0x121   : > { %v963_v44 = vpop.f32.mrb[8].mxu0 }
 0x122   : > { %519 = vst [vmem:[%s1367_s7 + $0x48] sm:$0xff] %v963_v44  ;;  %v995_v45 = vpop.f32.mrb[8].mxu1  ;;  %v471_v46 = vpop.f32.mrb[9].mxu0 }
 0x123   : > { %684 = vst [vmem:[%s1372_s13 + $0x48] sm:$0xff] %v995_v45  ;;  %518 = vst [vmem:[%s1367_s7 + $0x40] sm:$0xff] %v471_v46  ;;  %v636_v47 = vpop.f32.mrb[9].mxu1 }
 0x124   : > { %683 = vst [vmem:[%s1372_s13 + $0x40] sm:$0xff] %v636_v47 }
 0x125   : > { %v966_v48 = vpop.f32.mrb[10].mxu0 }
 0x126   : > { %521 = vst [vmem:[%s1367_s7 + $0x58] sm:$0xff] %v966_v48  ;;  %v998_v49 = vpop.f32.mrb[10].mxu1  ;;  %v481_v50 = vpop.f32.mrb[11].mxu0 }
 0x127   : > { %686 = vst [vmem:[%s1372_s13 + $0x58] sm:$0xff] %v998_v49  ;;  %520 = vst [vmem:[%s1367_s7 + $0x50] sm:$0xff] %v481_v50  ;;  %v646_v51 = vpop.f32.mrb[11].mxu1 }
 0x128   : > { %685 = vst [vmem:[%s1372_s13 + $0x50] sm:$0xff] %v646_v51 }
 0x129   : > { %v969_v52 = vpop.f32.mrb[12].mxu0 }
 0x12a   : > { %523 = vst [vmem:[%s1367_s7 + $0x68] sm:$0xff] %v969_v52  ;;  %v1001_v53 = vpop.f32.mrb[12].mxu1  ;;  %v491_v54 = vpop.f32.mrb[13].mxu0 }
 0x12b   : > { %688 = vst [vmem:[%s1372_s13 + $0x68] sm:$0xff] %v1001_v53  ;;  %522 = vst [vmem:[%s1367_s7 + $0x60] sm:$0xff] %v491_v54  ;;  %v656_v55 = vpop.f32.mrb[13].mxu1 }
 0x12c   : > { %687 = vst [vmem:[%s1372_s13 + $0x60] sm:$0xff] %v656_v55 }
 0x12d   : > { %v972_v56 = vpop.f32.mrb[14].mxu0 }
 0x12e   : > { %525 = vst [vmem:[%s1367_s7 + $0x78] sm:$0xff] %v972_v56  ;;  %v1004_v57 = vpop.f32.mrb[14].mxu1  ;;  %v501_v58 = vpop.f32.mrb[15].mxu0 }
 0x12f   : > { %690 = vst [vmem:[%s1372_s13 + $0x78] sm:$0xff] %v1004_v57  ;;  %524 = vst [vmem:[%s1367_s7 + $0x70] sm:$0xff] %v501_v58  ;;  %v666_v59 = vpop.f32.mrb[15].mxu1 }
 0x130   : > { %689 = vst [vmem:[%s1372_s13 + $0x70] sm:$0xff] %v666_v59 }
 0x131 PF: > { %s18_s20 = sadd.s32 1, %s1158_s20   ;;  %s1432_s15 = smov %s1142_s16 }
 0x132   : > { %p15_p9 = scmp.ge.s32.totalorder %s18_s20, 6   ;;  %s1433_s16 = smov %s1146_s17 }
 0x133   : > { %s1434_s17 = smov %s1237_s27  ;;  %s1435_s18 = smov %s1154_s19 }
 0x134   : > { %s1436_s19 = smov %s1438_s22  ;;  %17 = sbr.rel (!%p15_p9) target bundleno = 4 (0x4), region = 90 }
 0x13b   :  { %742 = vsyncpa [#allocation3], 1 }
 0x13c   :  { %744 = vsyncpa [#allocation3 + $0x1], 1 }

// kernel: reverse.1
= control target key start
LH: loop header
LB: loop body
LE: loop exit
PB: predicated region body
PF: predicated region fallthrough
CT: control target
= control target key end

     0   :  { %v2_v0 = vlaneseq  ;;  %s105_s0 = inlined_call_operand.vmem [shape: f32[2,63], index: 0, kind: input, shape index: {}]   ;;  %s106_s1 = inlined_call_operand.vmem [shape: f32[2,63], index: 1, kind: output, shape index: {}]  }
   0x2   :  { %v3_v1 = vsub.s32 62, %v2_v0 }
   0x4   :  { %4 = vset.pattern.permute.xlu0 %v3_v1 }
   0x5   :  { %v20_v2 = vld [vmem:[%s105_s0] sm:$0x3] }
   0x6   :  { %21 = vst [vmem:[#allocation1] sm:$0x3] %v20_v2 }
   0xd   :  { %v38_v3 = vld [vmem:[#allocation1] sm:$0x3] }
   0xe   :  { %39 = vst [vmem:[#allocation0] sm:$0x3] %v38_v3 }
  0x15   :  { %v40_v4 = vld [vmem:[#allocation0] sm:$0xff] }
  0x16   :  { %41 = vperm.xlu0 %4, %v40_v4  }
  0x95   :  { %v42_v5 = vpop.permute.xlu0 %41 }
  0x96   :  { %43 = vst [vmem:[#allocation2] sm:$0xff] %v42_v5 }
  0x9d   :  { %v47_v6 = vld [vmem:[#allocation2] sm:$0x3] }
  0x9e   :  { %49 = vst [vmem:[#allocation3] sm:$0x3] %v47_v6 }
  0xa5   :  { %v65_v7 = vld [vmem:[#allocation3] sm:$0x3] }
  0xa6   :  { %66 = vst [vmem:[%s106_s1] sm:$0x3] %v65_v7 }

// kernel: cbp_forward.3
= control target key start
LH: loop header
LB: loop body
LE: loop exit
PB: predicated region body
PF: predicated region fallthrough
CT: control target
= control target key end

     0   :  { %s872_s18 = smov 0   ;;  %s874_s19 = smov 0   ;;  %s994_s0 = inlined_call_operand.vmem [shape: f32[2,256,128], index: 0, kind: input, shape index: {}]   ;;  %s995_s1 = inlined_call_operand.vmem [shape: f32[2,256,128], index: 1, kind: input, shape index: {}]   ;;  %s996_s2 = inlined_call_operand.vmem [shape: f32[2,256,128], index: 2, kind: input, shape index: {}]   ;;  %s997_s3 = inlined_call_operand.vmem [shape: f32[2,256,128], index: 3, kind: input, shape index: {}]   ;;  %s998_s4 = inlined_call_operand.vmem [shape: f32[2,1,128], index: 4, kind: output, shape index: {0}]   ;;  %s999_s5 = inlined_call_operand.vmem [shape: f32[2,1,128], index: 5, kind: output, shape index: {1}]  }
   0x1   :  { %s876_s20 = smov 0   ;;  %s878_s21 = smov 0  }
   0x2   :  { %s880_s22 = smov 0  }
   0x3 LB: > { %s28_s23 = sadd.s32 1, %s831_s20  ;;  %s31_s24 = sadd.s32 1, %s835_s21  ;;  %s839_s22 = sphi %s880_s22, %s16_s22   ;;  %s835_s21 = sphi %s878_s21, %s1003_s21   ;;  %s831_s20 = sphi %s876_s20, %s1002_s20   ;;  %s827_s19 = sphi %s874_s19, %s1001_s19   ;;  %s823_s18 = sphi %s872_s18, %s1000_s18  }
   0x4   : > { %p29_p0 = scmp.ge.s32.totalorder %s28_s23, 4  ;;  %p743_p1 = scmp.ge.s32.totalorder %s839_s22, 1 }
   0x5   : > { %p291_p2 = scmp.lt.s32.totalorder %s839_s22, 9 }
   0x6   : > { %s1005_s23 = smov (%p29_p0, %s28_s23), 0  ;;  %s1007_s24 = smov (!%p29_p0, %s31_s24), %s835_s21 }
   0x7   : > { %p292_p3 = pnand %p743_p1, %p291_p2  ;;  %p33_p4 = scmp.ge.s32.totalorder %s1007_s24, 2 }
   0x8   : > { %s744_s25 = sshll.u32 (!%p292_p3), %s823_s18, 3  ;;  %p370_p5 = scmp.lt.s32.totalorder (!%p292_p3), %s827_s19, 1 }
   0x9   : > { %s1009_s24 = smov (%p33_p4, %s1007_s24), 0  ;;  %295 = sbr.rel (%p292_p3) target bundleno = 79 (0x4f), region = 36 }
   0xa   : > { %p372_p6 = scmp.lt.s32.totalorder (!%p292_p3), %s744_s25, 31  ;;  %p756_p7 = scmp.ne.s32.totalorder (!%p292_p3), %s823_s18, 0 }
  0x10   : > { %s1011_s19 = smov (!%p370_p5, %s827_s19), 1  ;;  %s1013_s25 = smov (!%p372_p6, %s744_s25), 31 }
  0x11   : > { %s745_s26 = sshll.u32 %s1011_s19, 5  ;;  %s908_s29 = scalar_lea.vmem %s998_s4, %s1011_s19  ;;  %v841_v0 = vmov (!%p756_p7), 0.0  }
  0x12   : > { %s378_s30 = sadd.s32 %s745_s26, %s1013_s25  ;;  %s913_s8 = scalar_lea.vmem %s999_s5, %s1011_s19  ;;  %437 = vst [vmem:[%s908_s29] sm:$0x1] (!%p756_p7), %v841_v0 }
  0x13   : > { %s746_s9 = sshll.u32 %s378_s30, 3  ;;  %436 = sbr.rel (%p756_p7) target bundleno = 26 (0x1a), region = 40  ;;  %438 = vst [vmem:[%s913_s8] sm:$0x1] (!%p756_p7), %v841_v0 }
  0x14   : > { %s918_s12 = scalar_lea.vmem %s994_s0, %s746_s9  ;;  %s923_s15 = scalar_lea.vmem %s995_s1, %s746_s9 }
  0x15   : > { %s928_s25 = scalar_lea.vmem %s996_s2, %s746_s9  ;;  %s933_s19 = scalar_lea.vmem %s997_s3, %s746_s9 }
  0x1a PF: > { %v439_v1 = vld [vmem:[%s918_s12] sm:$0xff]  ;;  %v440_v2 = vld [vmem:[%s918_s12 + $0x8] sm:$0xff]  ;;  %v441_v3 = vld [vmem:[%s918_s12 + $0x10] sm:$0xff]  ;;  %p757_p8 = scmp.ne.s32.totalorder %s823_s18, 3 }
  0x1b   : > { %v442_v4 = vld [vmem:[%s918_s12 + $0x18] sm:$0xff]  ;;  %v447_v5 = vld [vmem:[%s923_s15] sm:$0xff]  ;;  %v448_v7 = vld [vmem:[%s923_s15 + $0x8] sm:$0xff] }
  0x1c   : > { %v443_v6 = vld [vmem:[%s918_s12 + $0x20] sm:$0xff]  ;;  %v456_v9 = vld [vmem:[%s928_s25 + $0x8] sm:$0xff]  ;;  %v449_v10 = vld [vmem:[%s923_s15 + $0x10] sm:$0xff] }
  0x1d   : > { %v455_v8 = vld [vmem:[%s928_s25] sm:$0xff]  ;;  %v457_v11 = vld [vmem:[%s928_s25 + $0x10] sm:$0xff]  ;;  %v458_v12 = vld [vmem:[%s928_s25 + $0x18] sm:$0xff]  ;;  %v472_v18 = vmul.f32 %v456_v9, %v440_v2  ;;  %v504_v35 = vmul.f32 %v456_v9, %v448_v7 }
  0x1e   : > { %v444_v13 = vld [vmem:[%s918_s12 + $0x28] sm:$0xff]  ;;  %v450_v14 = vld [vmem:[%s923_s15 + $0x18] sm:$0xff]  ;;  %v451_v15 = vld [vmem:[%s923_s15 + $0x20] sm:$0xff]  ;;  %v471_v17 = vmul.f32 %v455_v8, %v439_v1  ;;  %v473_v22 = vmul.f32 %v457_v11, %v441_v3  ;;  %v474_v26 = vmul.f32 %v458_v12, %v442_v4  ;;  %v503_v34 = vmul.f32 %v455_v8, %v447_v5 }
  0x1f   : > { %v459_v16 = vld [vmem:[%s928_s25 + $0x20] sm:$0xff]  ;;  %v464_v20 = vld [vmem:[%s933_s19 + $0x8] sm:$0xff]  ;;  %v465_v21 = vld [vmem:[%s933_s19 + $0x10] sm:$0xff]  ;;  %v505_v42 = vmul.f32 %v457_v11, %v449_v10  ;;  %v506_v58 = vmul.f32 %v458_v12, %v450_v14 }
  0x20   : > { %v463_v19 = vld [vmem:[%s933_s19] sm:$0xff]  ;;  %v460_v23 = vld [vmem:[%s928_s25 + $0x28] sm:$0xff]  ;;  %v466_v24 = vld [vmem:[%s933_s19 + $0x18] sm:$0xff]  ;;  %v480_v28 = vmul.f32 %v464_v20, %v448_v7  ;;  %v481_v29 = vmul.f32 %v465_v21, %v449_v10  ;;  %v475_v32 = vmul.f32 %v459_v16, %v443_v6  ;;  %v496_v49 = vmul.f32 %v464_v20, %v440_v2 }
  0x21   : > { %v467_v25 = vld [vmem:[%s933_s19 + $0x20] sm:$0xff]  ;;  %v479_v27 = vmul.f32 %v463_v19, %v447_v5  ;;  %v452_v30 = vld [vmem:[%s923_s15 + $0x28] sm:$0xff]  ;;  %v482_v33 = vmul.f32 %v466_v24, %v450_v14  ;;  %v445_v36 = vld [vmem:[%s918_s12 + $0x30] sm:$0xff]  ;;  %v476_v46 = vmul.f32 %v460_v23, %v444_v13  ;;  %v495_v48 = vmul.f32 %v463_v19, %v439_v1 }
  0x22   : > { %v468_v31 = vld [vmem:[%s933_s19 + $0x28] sm:$0xff]  ;;  %v446_v37 = vld [vmem:[%s918_s12 + $0x38] sm:$0xff]  ;;  %v461_v38 = vld [vmem:[%s928_s25 + $0x30] sm:$0xff]  ;;  %v483_v39 = vmul.f32 %v467_v25, %v451_v15  ;;  %v488_v41 = vsub.f32 %v472_v18, %v480_v28  ;;  %v489_v47 = vsub.f32 %v473_v22, %v481_v29  ;;  %v497_v53 = vmul.f32 %v465_v21, %v441_v3 }
  0x23   : > { %v487_v40 = vsub.f32 %v471_v17, %v479_v27  ;;  %v453_v43 = vld [vmem:[%s923_s15 + $0x30] sm:$0xff]  ;;  %v462_v44 = vld [vmem:[%s928_s25 + $0x38] sm:$0xff]  ;;  %v484_v50 = vmul.f32 %v468_v31, %v452_v30  ;;  %v490_v51 = vsub.f32 %v474_v26, %v482_v33  ;;  %v477_v56 = vmul.f32 %v461_v38, %v445_v36 }
  0x24   : > { %v469_v45 = vld [vmem:[%s933_s19 + $0x30] sm:$0xff]  ;;  %v454_v54 = vld [vmem:[%s923_s15 + $0x38] sm:$0xff]  ;;  %v498_v57 = vmul.f32 %v466_v24, %v442_v4  ;;  %v478_v59 = vmul.f32 %v462_v44, %v446_v37  ;;  %v491_v61 = vsub.f32 %v475_v32, %v483_v39  ;;  %v499_v63 = vmul.f32 %v467_v25, %v443_v6 }
  0x25   : > { %v520_v52 = vadd.f32 %v488_v41, %v487_v40  ;;  %v470_v55 = vld [vmem:[%s933_s19 + $0x38] sm:$0xff]  ;;  %v485_v60 = vmul.f32 %v469_v45, %v453_v43  ;;  %v507_v0 = vmul.f32 %v459_v16, %v451_v15  ;;  %v511_v5 = vadd.f32 %v503_v34, %v495_v48 }
  0x26   : > { %v512_v7 = vadd.f32 %v504_v35, %v496_v49  ;;  %v486_v8 = vmul.f32 %v470_v55, %v454_v54  ;;  %v492_v1 = vsub.f32 %v476_v46, %v484_v50  ;;  %v513_v9 = vadd.f32 %v505_v42, %v497_v53 }
  0x27   : > { %v521_v62 = vadd.f32 %v520_v52, %v489_v47  ;;  %v500_v10 = vmul.f32 %v468_v31, %v444_v13  ;;  %v508_v11 = vmul.f32 %v460_v23, %v452_v30  ;;  %v514_v3 = vadd.f32 %v506_v58, %v498_v57 }
  0x28   : > { %v536_v17 = vadd.f32 %v512_v7, %v511_v5  ;;  %v493_v18 = vsub.f32 %v477_v56, %v485_v60  ;;  %v501_v4 = vmul.f32 %v469_v45, %v445_v36  ;;  %v509_v12 = vmul.f32 %v461_v38, %v453_v43  ;;  %v519_v38 = vld [vmem:[%s908_s29] sm:$0x1] }
  0x29   : > { %v522_v2 = vadd.f32 %v521_v62, %v490_v51  ;;  %v515_v14 = vadd.f32 %v507_v0, %v499_v63  ;;  %v494_v21 = vsub.f32 %v478_v59, %v486_v8  ;;  %v502_v6 = vmul.f32 %v470_v55, %v446_v37 }
  0x2a   : > { %v537_v20 = vadd.f32 %v536_v17, %v513_v9  ;;  %v510_v15 = vmul.f32 %v462_v44, %v454_v54  ;;  %v516_v16 = vadd.f32 %v508_v11, %v500_v10  ;;  %v517_v26 = vadd.f32 %v509_v12, %v501_v4  ;;  %v535_v44 = vld [vmem:[%s913_s8] sm:$0x1] }
  0x2b   : > { %v523_v19 = vadd.f32 %v522_v2, %v491_v61 }
  0x2c   : > { %v538_v24 = vadd.f32 %v537_v20, %v514_v3  ;;  %v518_v23 = vadd.f32 %v510_v15, %v502_v6 }
  0x2d   : > { %v524_v22 = vadd.f32 %v523_v19, %v492_v1 }
  0x2e   : > { %v539_v27 = vadd.f32 %v538_v24, %v515_v14 }
  0x2f   : > { %v525_v25 = vadd.f32 %v524_v22, %v493_v18 }
  0x30   : > { %v540_v28 = vadd.f32 %v539_v27, %v516_v16 }
  0x31   : > { %v526_v13 = vadd.f32 %v525_v25, %v494_v21 }
  0x32   : > { %v541_v30 = vadd.f32 %v540_v28, %v517_v26 }
  0x33   : > { %v527_v29 = vrot.slane %v526_v13, 4 }
  0x34   : > { %v542_v32 = vadd.f32 %v541_v30, %v518_v23 }
  0x35   : > { %v528_v31 = vadd.f32 %v527_v29, %v526_v13 }
  0x36   : > { %v543_v34 = vrot.slane %v542_v32, 4 }
  0x37   : > { %v529_v33 = vrot.slane %v528_v31, 2 }
  0x38   : > { %v544_v36 = vadd.f32 %v543_v34, %v542_v32 }
  0x39   : > { %v530_v35 = vadd.f32 %v529_v33, %v528_v31 }
  0x3a   : > { %v545_v39 = vrot.slane %v544_v36, 2 }
  0x3b   : > { %v531_v37 = vrot.slane %v530_v35, 1 }
  0x3c   : > { %v546_v41 = vadd.f32 %v545_v39, %v544_v36 }
  0x3d   : > { %v532_v40 = vadd.f32 %v531_v37, %v530_v35 }
  0x3e   : > { %v547_v43 = vrot.slane %v546_v41, 1  ;;  %554 = sbr.rel (%p757_p8) target bundleno = 79 (0x4f), region = 44 }
  0x3f   : > { %v533_v42 = vadd.f32 %v532_v40, %v519_v38 }
  0x40   : > { %v548_v45 = vadd.f32 %v547_v43, %v546_v41 }
  0x41   : > { %534 = vst [vmem:[%s908_s29] sm:$0x1] %v533_v42 }
  0x42   : > { %v549_v46 = vadd.f32 %v548_v45, %v535_v44 }
  0x44   : > { %550 = vst [vmem:[%s913_s8] sm:$0x1] %v549_v46 }
  0x48   : > { %v555_v47 = vld [vmem:[%s908_s29] sm:$0x1] }
  0x49   : > { %v556_v49 = vmul.f32 0.00390625, %v555_v47 }
  0x4b   : > { %v558_v48 = vld [vmem:[%s913_s8] sm:$0x1]  ;;  %557 = vst [vmem:[%s908_s29] sm:$0x1] %v556_v49 }
  0x4c   : > { %v559_v50 = vmul.f32 0.00390625, %v558_v48 }
  0x4e   : > { %560 = vst [vmem:[%s913_s8] sm:$0x1] %v559_v50 }
  0x4f PF: > { %s16_s22 = sadd.s32 1, %s839_s22   ;;  %s1000_s18 = smov %s831_s20 }
  0x50   : > { %p13_p9 = scmp.ge.s32.totalorder %s16_s22, 10   ;;  %s1001_s19 = smov %s835_s21 }
  0x51   : > { %s1002_s20 = smov %s1005_s23  ;;  %s1003_s21 = smov %s1009_s24 }
  0x52   :  { %15 = sbr.rel (!%p13_p9) target bundleno = 3 (0x3), region = 95 }

</bundles_post_ra>
